<compile_context>
chip_gen: v5e
topology: v5e:2x2
jax: 0.10.0
libtpu: 0.0.40
codegen_flags: <defaults>
</compile_context>

<pallas_src>
import jax
import jax.numpy as jnp
from jax.experimental import pallas as pl
from jax.experimental.pallas import tpu as pltpu

NUM_MODELS = 3


def _mean_fold_kernel(x_ref, w_ref, b_ref, o_ref):
    """x_ref: (1, C, TL)  w_ref: (Cout, C)  b_ref: (Cout, 1)  o_ref: (1, Cout, TL).

    Computes sigmoid(W @ x + b) with the folded (already averaged) weights.
    The matmul is K=C (tiny) so the MXU is underused, but the kernel is
    HBM-bandwidth bound and the apply hides entirely under the DMA.
    """
    x = x_ref[0].astype(jnp.float32)                     # (C, TL)
    w = w_ref[...].astype(jnp.float32)                   # (Cout, C)
    b = b_ref[...].astype(jnp.float32)                   # (Cout, 1)
    acc = jnp.dot(w, x, preferred_element_type=jnp.float32) + b   # (Cout, TL)
    o_ref[0] = jax.nn.sigmoid(acc).astype(o_ref.dtype)


def mean_aggregate(x_nchw, weights, biases, *, max_tile_l: int = 8192):
    """x_nchw: (N, C, H, W);  weights: (num_models, C, Cout); biases: (num_models, Cout)."""
    n, c, h, w = x_nchw.shape
    num_models, c_in, c_out = weights.shape
    assert c_in == c

    # Fold the per-model linear maps.  The mean is applied *before* the
    # activation, so this is mathematically exact.
    w_fold_t = (jnp.sum(weights, axis=0) / num_models).T.astype(jnp.float32)   # (Cout, C)
    b_fold = (jnp.sum(biases, axis=0) / num_models).reshape(c_out, 1).astype(jnp.float32)

    # NCHW is already (N, C, H*W) row-major: a pure reshape, no HBM transpose.
    l = h * w
    x_ncl = x_nchw.reshape(n, c, l)

    # Lane-dense spatial tile: multiple of 128, as large as reasonable.
    if l <= max_tile_l:
        tile_l = ((l + 127) // 128) * 128
    else:
        tile_l = max_tile_l
    l_pad = ((l + tile_l - 1) // tile_l) * tile_l
    if l_pad != l:
        x_ncl = jnp.pad(x_ncl, ((0, 0), (0, 0), (0, l_pad - l)))

    grid = (n, l_pad // tile_l)

    out_ncl = pl.pallas_call(
        _mean_fold_kernel,
        out_shape=jax.ShapeDtypeStruct((n, c_out, l_pad), x_nchw.dtype),
        grid_spec=pltpu.PrefetchScalarGridSpec(
            num_scalar_prefetch=0,
            grid=grid,
            in_specs=[
                pl.BlockSpec((1, c, tile_l), lambda i, j: (i, 0, j)),
                pl.BlockSpec((c_out, c), lambda i, j: (0, 0)),     # resident
                pl.BlockSpec((c_out, 1), lambda i, j: (0, 0)),     # resident
            ],
            out_specs=pl.BlockSpec((1, c_out, tile_l), lambda i, j: (i, 0, j)),
        ),
        compiler_params=pltpu.CompilerParams(
            dimension_semantics=("parallel", "parallel")),
    )(x_ncl, w_fold_t, b_fold)

    # Drop spatial padding (no-op slice when l_pad == l) and restore NCHW.
    return out_ncl[:, :, :l].reshape(n, c_out, h, w)


def reference(x_nchw, weights, biases):
    """Pure-JAX reference mirroring the PyTorch Mean.forward semantics."""
    num_models = weights.shape[0]
    acc = None
    for m in range(num_models):
        # 1x1 conv on NCHW: einsum over channel dim
        y = jnp.einsum("nchw,co->nohw", x_nchw.astype(jnp.float32),
                       weights[m].astype(jnp.float32)) \
            + biases[m].astype(jnp.float32)[None, :, None, None]
        acc = y if acc is None else acc + y
    return jax.nn.sigmoid(acc / num_models).astype(x_nchw.dtype)


if __name__ == "__main__":
    key = jax.random.PRNGKey(0)
    kx, kw, kb = jax.random.split(key, 3)

    N, C, H, W = 2, 4, 16, 16          # input shape (NCHW)
    C_OUT = 4                           # per-model output channels

    x = jax.random.normal(kx, (N, C, H, W), dtype=jnp.float32)
    weights = 0.1 * jax.random.normal(kw, (NUM_MODELS, C, C_OUT), dtype=jnp.float32)
    biases = 0.1 * jax.random.normal(kb, (NUM_MODELS, C_OUT), dtype=jnp.float32)

    out = mean_aggregate(x, weights, biases)
    out = jax.block_until_ready(out)

    ref = reference(x, weights, biases)
    assert out.shape == (N, C_OUT, H, W), out.shape
    assert jnp.allclose(out, ref, atol=1e-5, rtol=1e-5), \
        float(jnp.max(jnp.abs(out - ref)))

    print("KERNEL_OK")
</pallas_src>

<mosaic_0001>
module attributes {stable_mosaic.version = 11 : i64} {
  func.func @_mean_fold_kernel(%arg0: i32, %arg1: i32, %arg2: memref<1x4x256xf32, #tpu.memory_space<vmem>>, %arg3: memref<4x4xf32, #tpu.memory_space<vmem>>, %arg4: memref<4x1xf32, #tpu.memory_space<vmem>>, %arg5: memref<1x4x256xf32, #tpu.memory_space<vmem>>) attributes {dimension_semantics = [#tpu.dimension_semantics<parallel>, #tpu.dimension_semantics<parallel>], iteration_bounds = array<i64: 2, 1>, scalar_prefetch = 0 : i64, scratch_operands = 0 : i64, tpu.core_type = #tpu.core_type<tc>, window_params = [{transform_indices = @transform_0, window_bounds = array<i64: 1, 4, 256>}, {pipeline_mode = #tpu.pipeline_mode<synchronous>, transform_indices = @transform_1, window_bounds = array<i64: 4, 4>}, {pipeline_mode = #tpu.pipeline_mode<synchronous>, transform_indices = @transform_2, window_bounds = array<i64: 4, 1>}, {transform_indices = @transform_3, window_bounds = array<i64: 1, 4, 256>}]} {
    %c0 = arith.constant 0 : index
    %c0_0 = arith.constant 0 : index
    %c0_1 = arith.constant 0 : index
    %0 = vector.load %arg2[%c0, %c0_0, %c0_1] : memref<1x4x256xf32, #tpu.memory_space<vmem>>, vector<1x4x256xf32>
    %1 = vector.shape_cast %0 : vector<1x4x256xf32> to vector<4x256xf32>
    %c0_2 = arith.constant 0 : index
    %c0_3 = arith.constant 0 : index
    %2 = vector.load %arg3[%c0_2, %c0_3] : memref<4x4xf32, #tpu.memory_space<vmem>>, vector<4x4xf32>
    %c0_4 = arith.constant 0 : index
    %c0_5 = arith.constant 0 : index
    %3 = vector.load %arg4[%c0_4, %c0_5] : memref<4x1xf32, #tpu.memory_space<vmem>>, vector<4x1xf32>
    %cst = arith.constant dense<0.000000e+00> : vector<4x256xf32>
    %4 = tpu.matmul %2, %1, %cst {dimension_numbers = #tpu.dot_dimension_numbers<[1], [0], [0], [1], [0, 0, 1, 1], [], []>} : vector<4x4xf32>, vector<4x256xf32>, vector<4x256xf32> -> vector<4x256xf32>
    %5 = vector.broadcast %3 : vector<4x1xf32> to vector<4x256xf32>
    %6 = arith.addf %4, %5 : vector<4x256xf32>
    %7 = arith.negf %6 : vector<4x256xf32>
    %8 = math.exp %7 : vector<4x256xf32>
    %cst_6 = arith.constant 1.000000e+00 : f32
    %9 = vector.broadcast %cst_6 : f32 to vector<4x256xf32>
    %10 = arith.addf %9, %8 : vector<4x256xf32>
    %11 = arith.divf %9, %10 : vector<4x256xf32>
    %c0_7 = arith.constant 0 : index
    %c0_8 = arith.constant 0 : index
    %c0_9 = arith.constant 0 : index
    %12 = vector.load %arg5[%c0_7, %c0_8, %c0_9] : memref<1x4x256xf32, #tpu.memory_space<vmem>>, vector<1x4x256xf32>
    %13 = vector.shape_cast %12 : vector<1x4x256xf32> to vector<4x256xf32>
    %14 = vector.shape_cast %11 : vector<4x256xf32> to vector<1x4x256xf32>
    tpu.vector_store %arg5[%c0_7, %c0_8, %c0_9], %14 {strides = array<i32>} : memref<1x4x256xf32, #tpu.memory_space<vmem>>, vector<1x4x256xf32>,
    return
  }
  func.func @transform_0(%arg0: i32, %arg1: i32) -> (i32, i32, i32) {
    %c0_i32 = arith.constant 0 : i32
    %c0_i32_0 = arith.constant 0 : i32
    return %arg0, %c0_i32, %arg1 : i32, i32, i32
  }
  func.func @transform_1(%arg0: i32, %arg1: i32) -> (i32, i32) {
    %c0_i32 = arith.constant 0 : i32
    %c0_i32_0 = arith.constant 0 : i32
    %c0_i32_1 = arith.constant 0 : i32
    return %c0_i32, %c0_i32_0 : i32, i32
  }
  func.func @transform_2(%arg0: i32, %arg1: i32) -> (i32, i32) {
    %c0_i32 = arith.constant 0 : i32
    %c0_i32_0 = arith.constant 0 : i32
    %c0_i32_1 = arith.constant 0 : i32
    return %c0_i32, %c0_i32_0 : i32, i32
  }
  func.func @transform_3(%arg0: i32, %arg1: i32) -> (i32, i32, i32) {
    %c0_i32 = arith.constant 0 : i32
    %c0_i32_0 = arith.constant 0 : i32
    return %arg0, %c0_i32, %arg1 : i32, i32, i32
  }
}

</mosaic_0001>

<bundles_post_ra>
// kernel: tpu_custom_call.1
= control target key start
LH: loop header
LB: loop body
LE: loop exit
PB: predicated region body
PF: predicated region fallthrough
CT: control target
= control target key end

     0   :  { %8 = vsyncpa [#allocation3], 0  ;;  %s786_s0 = inlined_call_operand.hbm [shape: f32[2,4,256], index: 0, kind: input, shape index: {}]   ;;  %s787_s1 = inlined_call_operand.vmem [shape: f32[4,4], index: 1, kind: input, shape index: {}]   ;;  %s788_s2 = inlined_call_operand.vmem [shape: f32[4,1], index: 2, kind: input, shape index: {}]   ;;  %s789_s3 = inlined_call_operand.hbm [shape: f32[2,4,256], index: 3, kind: output, shape index: {}]  }
   0x1   :  { %10 = vsyncpa [#allocation3 + $0x1], 0 }
   0x2   :  { %11 = vsyncpa [#allocation4], 0 }
   0x3   :  { %13 = vsyncpa [#allocation4 + $0x1], 0  ;;  %s647_s12 = smov 0   ;;  %s649_s13 = smov 0  }
   0x4   :  { %s651_s14 = smov 0   ;;  %s653_s15 = smov 0  }
   0x5   :  { %s655_s16 = smov 0   ;;  %s657_s17 = smov 0  }
   0x6 LB: > { %s417_s18 = sadd.s32 4294967295, %s624_s17   ;;  %s418_s19 = sadd.s32 4294967294, %s624_s17   ;;  %s624_s17 = sphi %s657_s17, %s19_s17   ;;  %s620_s16 = sphi %s655_s16, %s800_s16   ;;  %s616_s15 = sphi %s653_s15, %s799_s15   ;;  %s612_s14 = sphi %s651_s14, %s798_s14   ;;  %s608_s13 = sphi %s649_s13, %s797_s13   ;;  %s604_s12 = sphi %s647_s12, %s796_s12  }
   0x7   : > { %s31_s20 = sadd.s32 1, %s620_s16  ;;  %s40_s21 = sadd.s32 1, %s612_s14 }
   0x8   : > { %p33_p0 = scmp.ge.s32.totalorder %s31_s20, 2  ;;  %p47_p1 = scmp.ne.s32.totalorder %s612_s14, %s608_s13 }
   0x9   : > { %p48_p2 = scmp.eq.s32.totalorder %s624_s17, 0  ;;  %p53_p3 = scmp.ne.s32.totalorder %s608_s13, %s604_s12 }
   0xa   : > { %s802_s20 = smov (%p33_p0, %s31_s20), 0  ;;  %p54_p5 = scmp.eq.s32.totalorder %s417_s18, 0 }
   0xb   : > { %p688_p4 = por %p48_p2, %p47_p1  ;;  %s35_s23 = ssub.s32 %s620_s16, %s802_s20 }
   0xc   : > { %p121_p6 = scmp.eq.s32.totalorder %s417_s18, 1  ;;  %p38_p7 = scmp.eq.s32.totalorder %s35_s23, 0 }
   0xd   : > { %p694_p8 = por %p54_p5, %p53_p3  ;;  %p127_p10 = scmp.eq.s32.totalorder %s418_s19, 1 }
   0xe   : > { %p698_p9 = por %p121_p6, %p47_p1  ;;  %p420_p12 = scmp.ge.s32.totalorder %s624_s17, 2 }
   0xf   : > { %s703_s26 = scalar_select %p38_p7, %s612_s14, %s40_s21  }
  0x10   : > { %p705_p11 = por %p127_p10, %p53_p3  ;;  %p452_p13 = scmp.lt.s32.totalorder %s624_s17, 2 }
  0x11   : > { %s153_s28 = sand.u32 1, %s612_s14   ;;  %s438_s30 = sshll.u32 %s620_s16, 3 }
  0x12   : > { %s421_s29 = sshll.u32 %s153_s28, 3  ;;  %s164_s6 = scalar_lea.hbm %s786_s0, %s438_s30 }
  0x13   : > { %s157_s7 = scalar_lea.vmem [#allocation2], %s421_s29  ;;  %s166_s9 = sshll.u32 %s164_s6, 4  ;;  %s167_s9 = int_to_ptr.hbm [resolvable:$true] %s166_s9 }
  0x14   : > { %s168_s8 = sshll.u32 %s157_s7, 4  ;;  %p445_p0 = pnand %p452_p13, %p688_p4  ;;  %s169_s8 = int_to_ptr.vmem [resolvable:$true] %s168_s8 }
  0x15   : > { %p424_p1 = scmp.ge.s32.totalorder %s624_s17, 1  ;;  %p173_p2 = scmp.lt.s32.totalorder %s624_s17, 3 }
  0x16   : > { %s154_s10 = scalar_lea.sflag [#allocation3], %s153_s28 }
  0x17   : > { %447 = dma.hbm_to_vmem [thread:$0]  (!%p445_p0), %s167_s9, 128, %s169_s8, %s154_s10  }
  0x18   : > { %p174_p3 = pnand %p424_p1, %p173_p2 }
  0x19   : > { %s721_s11 = sand.u32 (!%p174_p3), 1, %s608_s13  }
  0x1a   : > { %177 = sbr.rel (%p174_p3) target bundleno = 205 (0xcd), region = 32  ;;  %s425_s18 = sshll.u32 (!%p174_p3), %s721_s11, 3 }
  0x1b   : > { %s180_s19 = scalar_lea.sflag (!%p174_p3), [#allocation3], %s721_s11  ;;  %s183_s21 = scalar_lea.vmem (!%p174_p3), [#allocation2], %s425_s18 }
  0x1f   : > { %595 = dma.done.wait (%p694_p8), %s180_s19, 128  }
  0x20   : > { %597 = vsyncadd (%p694_p8), %s180_s19, 4294967168  ;;  %v626_v0 = vmov 0   ;;  %v209_v1 = vld [vmem:[%s183_s21] sm:$0xff]  ;;  %v211_v2 = vld [vmem:[%s788_s2] sm:$0xf]  ;;  %vm225_vm0 = vcmask 1043456  }
  0x21   : > { %503 = vset.pattern.permute.xlu0 %v626_v0  ;;  %218 = vst [vmem:[#allocation1] ss:$2 sm:$0xff] %v209_v1  ;;  %v210_v3 = vld [vmem:[%s787_s1] sm:$0xf]  ;;  %vm221_vm1 = vcmask 31744   ;;  %s439_s24 = sshll.u32 %s616_s15, 3 }
  0x22   : > { %214 = vperm.xlu0 %503, %v211_v2   ;;  %s328_s5 = scalar_lea.hbm %s789_s3, %s439_s24  ;;  %s206_s15 = scalar_lea.vmem [#allocation5], %s425_s18 }
  0x23   : > { %s330_s6 = sshll.u32 %s206_s15, 4  ;;  %s332_s7 = sshll.u32 %s328_s5, 4  ;;  %s331_s6 = int_to_ptr.vmem [resolvable:$true] %s330_s6  ;;  %s333_s7 = int_to_ptr.hbm [resolvable:$true] %s332_s7 }
  0x24   : > { %s315_s8 = scalar_lea.sflag [#allocation4], %s721_s11  ;;  %s556_s9 = sshra.s32 %s333_s7, 4  ;;  %s557_s9 = int_to_ptr.hbm [resolvable:$true] %s556_s9 }
  0x25   : > { %s558_s10 = scalar_lea.hbm %s557_s9, 8  ;;  %s562_s21 = scalar_lea.hbm %s789_s3, 16 }
  0x26   : > { %p559_p4 = scmp.ne.s32.totalorder %s557_s9, %s558_s10  ;;  %p563_p7 = scmp.lt.s32.totalorder %s557_s9, %s789_s3 }
  0x27   : > { %p564_p8 = scmp.lt.s32.totalorder %s562_s21, %s558_s10 }
  0x28   : > { %v219_v4 = vld.sshfl [vmem:[#allocation1] sm:$0xff pattern:$0x75316420]  ;;  %v220_v5 = vld.sshfl [vmem:[#allocation1 + $0x8] sm:$0xff pattern:$0x75316420]  ;;  %p560_p5 = pnand %p559_p4, %p698_p9 }
  0x29   : > { %427 = vmatpush.msk.msra.mxu0 %vm225_vm0, %v219_v4  ;;  %429 = vmatpush.msk.msra.mxu1 %vm225_vm0, %v220_v5  ;;  %p565_p10 = por %p564_p8, %p563_p7 }
  0x2a   : > { %428 = vmatmul.msk.f32.vlgmr.msra.gmra.mxu0 %vm221_vm1, %v210_v3  ;;  %430 = vmatmul.msk.f32.vlgmr.msra.gmra.mxu1 %vm221_vm1, %v210_v3  ;;  %p561_p6 = pneg %p560_p5 }
  0x2c   : > { %p566_p13 = pnand %p565_p10, %p561_p6 }
  0x94   : > { %v215_v6 = vpop.permute.xlu0 %214 }
  0xa7   : > { %v247_v7 = vpop.f32.mrf.mxu0  ;;  %v267_v8 = vpop.f32.mrf.mxu1 }
  0xa8   : > { %v248_v9 = vadd.f32 %v247_v7, %v215_v6  ;;  %v268_v10 = vadd.f32 %v267_v8, %v215_v6 }
  0xaa   : > { %v431_v11 = vmul.f32 -1.442695, %v248_v9  ;;  %v432_v12 = vmul.f32 -1.442695, %v268_v10 }
  0xac   : > { %504 = vpow2.f32 %v431_v11 }
  0xad   : > { %506 = vpow2.f32 %v432_v12 }
  0xb2   : > { %v505_v13 = vpop.eup %504 }
  0xb3   : > { %v507_v14 = vpop.eup %506  ;;  %v276_v15 = vadd.f32 1.0, %v505_v13 }
  0xb4   : > { %v277_v16 = vadd.f32 1.0, %v507_v14 }
  0xb5   : > { %508 = vrcp.f32 %v276_v15  ;;  %vm283_vm4 = vweird.f32 %v276_v15  ;;  %v289_v28 = vand.u32 2147483648, %v276_v15  ;;  %v287_v30 = vand.u32 2147483647, %v276_v15 }
  0xb6   : > { %510 = vrcp.f32 %v277_v16  ;;  %v304_v24 = vand.u32 2147483648, %v277_v16  ;;  %v302_v26 = vand.u32 2147483647, %v277_v16  ;;  %vm298_vm5 = vweird.f32 %v277_v16 }
  0xb7   : > { %v290_v35 = vor.u32 1.1754944e-38, %v289_v28  ;;  %vm288_vm9 = vcmp.eq.f32.partialorder %v287_v30, 8.507059e+37 }
  0xb8   : > { %v305_v32 = vor.u32 1.1754944e-38, %v304_v24  ;;  %vm303_vm8 = vcmp.eq.f32.partialorder %v302_v26, 8.507059e+37 }
  0xbb   : > { %v509_v17 = vpop.eup %508 }
  0xbc   : > { %v511_v18 = vpop.eup %510  ;;  %v279_v19 = vmul.f32 %v509_v17, %v276_v15  ;;  %vm284_vm2 = vweird.f32 %v509_v17 }
  0xbd   : > { %v294_v20 = vmul.f32 %v511_v18, %v277_v16  ;;  %vm299_vm3 = vweird.f32 %v511_v18  ;;  %vm743_vm6 = vmor %vm283_vm4, %vm284_vm2 }
  0xbe   : > { %v280_v21 = vsub.f32 1.0, %v279_v19  ;;  %vm300_vm7 = vmor %vm298_vm5, %vm299_vm3 }
  0xbf   : > { %v295_v22 = vsub.f32 1.0, %v294_v20 }
  0xc0   : > { %v281_v23 = vmul.f32 %v509_v17, %v280_v21 }
  0xc1   : > { %v296_v25 = vmul.f32 %v511_v18, %v295_v22 }
  0xc2   : > { %v282_v27 = vadd.f32 %v509_v17, %v281_v23 }
  0xc3   : > { %v297_v31 = vadd.f32 %v511_v18, %v296_v25 }
  0xc4   : > { %v286_v33 = vsel %vm743_vm6, %v509_v17, %v282_v27 }
  0xc5   : > { %v301_v34 = vsel %vm300_vm7, %v511_v18, %v297_v31  ;;  %v291_v38 = vsel %vm288_vm9, %v290_v35, %v286_v33 }
  0xc6   : > { %v306_v36 = vsel %vm303_vm8, %v305_v32, %v301_v34 }
  0xc7   : > { %v310_v37 = vrot.slane %v306_v36, 4 }
  0xc9   : > { %v311_v39 = vsel %vm225_vm0, %v291_v38, %v310_v37 }
  0xca   : > { %313 = vst [vmem:[%s206_s15] sm:$0xff] %v311_v39 }
  0xcb   : > { %569 = shalt.err (!%p566_p13)
}
  0xcc   : > { %442 = dma.vmem_to_hbm [thread:$0]  (%p698_p9), %s331_s6, 128, %s333_s7, %s315_s8  }
  0xcd PF: > { %s344_s11 = sand.u32 1, %s604_s12   ;;  %p449_p0 = pnand %p420_p12, %p705_p11 }
  0xce   : > { %s345_s28 = scalar_lea.sflag [#allocation4], %s344_s11 }
  0xcf   : > { %p450_p1 = pneg %p449_p0 }
  0xd1   : > { %599 = dma.done.wait (%p450_p1), %s345_s28, 128  }
  0xd2   : > { %601 = vsyncadd (%p450_p1), %s345_s28, 4294967168  ;;  %s19_s17 = sadd.s32 1, %s624_s17   ;;  %s796_s12 = smov %s608_s13 }
  0xd3   : > { %p16_p2 = scmp.ge.s32.totalorder %s19_s17, 4   ;;  %s797_s13 = smov %s612_s14 }
  0xd4   : > { %s798_s14 = smov %s703_s26  ;;  %s799_s15 = smov %s620_s16 }
  0xd5   : > { %s800_s16 = smov %s802_s20  ;;  %18 = sbr.rel (!%p16_p2) target bundleno = 6 (0x6), region = 77 }
  0xda   :  { %351 = vsyncpa [#allocation3], 1 }
  0xdb   :  { %353 = vsyncpa [#allocation3 + $0x1], 1 }
  0xdc   :  { %354 = vsyncpa [#allocation4], 1 }
  0xdd   :  { %356 = vsyncpa [#allocation4 + $0x1], 1 }

</bundles_post_ra>
